<compile_context>
chip_gen: v6e
topology: v6e:2x2x1
jax: 0.10.0
libtpu: 0.0.40
codegen_flags: <defaults>
</compile_context>

<pallas_src>
import jax
import jax.numpy as jnp
from jax.experimental import pallas as pl
from jax.experimental.pallas import tpu as pltpu


# ~2 MiB per tile: big enough to amortize per-grid-step overhead (measured
# copy kernels reach ~85% of HBM roofline at >=512-edge f32 tiles), small
# enough that double-buffered input + output (4 live tiles ~= 8 MiB) fits the
# default scoped VMEM on every generation, including v7x (64 MiB physical).
_TARGET_TILE_BYTES = 2 * 1024 * 1024


def _copy_kernel(x_ref, o_ref):
    # Pure tile copy (no arithmetic); purely HBM-DMA bound.
    o_ref[...] = x_ref[...]


def _materialize_2d(x2, *, alias_input=False):
    """Lane-dense, tiled HBM -> VMEM -> HBM copy of a 2-D array."""
    rows, cols = x2.shape
    itemsize = x2.dtype.itemsize

    # Rows per tile sized to ~_TARGET_TILE_BYTES; keep the sublane dim a
    # multiple of 8 (or the full dim) to satisfy TPU layout rules.
    tile_rows = max(1, _TARGET_TILE_BYTES // max(1, cols * itemsize))
    if tile_rows >= rows:
        tile_rows = rows                             # single block along rows
    else:
        tile_rows = max(8, (tile_rows // 8) * 8)     # 8-sublane aligned

    grid = (pl.cdiv(rows, tile_rows),)
    spec = pl.BlockSpec((tile_rows, cols), lambda i: (i, 0))

    return pl.pallas_call(
        _copy_kernel,
        out_shape=jax.ShapeDtypeStruct((rows, cols), x2.dtype),
        grid=grid,
        in_specs=[spec],
        out_specs=spec,
        # Optional buffer reuse: effective when the caller donates the input
        # at a jit boundary; otherwise XLA falls back to a defensive copy.
        input_output_aliases={0: 0} if alias_input else {},
        compiler_params=pltpu.CompilerParams(
            dimension_semantics=("parallel",)),      # shards grid across TCs
    )(x2)


def pallas_squeeze(x, dim=-1, *, materialize=False, alias_input=False):
    """Reproduces torch.squeeze(x, dim): drops axis `dim` iff it has size 1.

    Default: metadata-only reshape (no kernel, no HBM traffic).
    materialize=True: result is produced by the tiled Pallas copy kernel.
    """
    if x.ndim == 0:
        return x
    d = dim % x.ndim
    if x.shape[d] != 1:
        # torch.squeeze(data, dim) is a no-op when size(dim) != 1; return the
        # input directly -- never launch a copy kernel for an identity op.
        return x

    out_shape = x.shape[:d] + x.shape[d + 1:]
    xv = x.reshape(out_shape)            # metadata-only: this IS the squeeze
    if not materialize or xv.size == 0:
        return xv

    total = xv.size
    # Lane-dense 2-D factorization: pick the largest cols in {4096..128} that
    # divides the element count so the output last dim is a multiple of 128
    # (unmasked vst instead of masked partial stores).
    cols = next((c for c in (4096, 2048, 1024, 512, 256, 128)
                 if total % c == 0), None)
    if cols is not None:
        rows = total // cols
    elif xv.ndim >= 2:
        # Element count not 128-divisible: keep the full last dim as the lane
        # dim (full-extent block dims are always layout-legal).
        cols = xv.shape[-1]
        rows = total // cols
    else:
        rows, cols = 1, total

    y2 = _materialize_2d(xv.reshape(rows, cols), alias_input=alias_input)
    return y2.reshape(out_shape)


if __name__ == "__main__":
    key = jax.random.PRNGKey(0)
    k1, k2 = jax.random.split(key)

    # Case 1: trailing size-1 axis (B=2, C=4, H=16, 1) -> squeeze removes it.
    # materialize=True exercises the Pallas copy kernel.
    x = jax.random.normal(k1, (2, 4, 16, 1), dtype=jnp.float32)
    y = pallas_squeeze(x, dim=-1, materialize=True)
    jax.block_until_ready(y)
    assert y.shape == (2, 4, 16), y.shape
    assert jnp.array_equal(y, jnp.squeeze(x, axis=-1))

    # Default (recommended) path: metadata-only, no kernel launched.
    y_fast = pallas_squeeze(x, dim=-1)
    jax.block_until_ready(y_fast)
    assert y_fast.shape == (2, 4, 16)
    assert jnp.array_equal(y_fast, jnp.squeeze(x, axis=-1))

    # Case 2: size(dim) != 1 -> torch.squeeze(data, dim=-1) is a no-op; the
    # input is returned directly (no HBM read/write at all).
    x2 = jax.random.normal(k2, (2, 4, 16, 16), dtype=jnp.float32)
    y2 = pallas_squeeze(x2, dim=-1)
    jax.block_until_ready(y2)
    assert y2.shape == (2, 4, 16, 16), y2.shape
    assert jnp.array_equal(y2, x2)

    # Case 3: larger input -> materialized via a multi-step, lane-dense grid
    # (block (128, 4096) f32 = 2 MiB, grid of 2 parallel steps).
    x3 = jax.random.normal(key, (8, 256, 512, 1), dtype=jnp.float32)
    y3 = pallas_squeeze(x3, dim=-1, materialize=True)
    jax.block_until_ready(y3)
    assert y3.shape == (8, 256, 512), y3.shape
    assert jnp.array_equal(y3, jnp.squeeze(x3, axis=-1))

    print("KERNEL_OK")
</pallas_src>

<mosaic_0001>
module attributes {stable_mosaic.version = 11 : i64} {
  func.func @_copy_kernel(%arg0: i32, %arg1: memref<1x128xf32, #tpu.memory_space<vmem>>, %arg2: memref<1x128xf32, #tpu.memory_space<vmem>>) attributes {dimension_semantics = [#tpu.dimension_semantics<parallel>], iteration_bounds = array<i64: 1>, scalar_prefetch = 0 : i64, scratch_operands = 0 : i64, tpu.core_type = #tpu.core_type<tc>, window_params = [{transform_indices = @transform_0, window_bounds = array<i64: 1, 128>}, {transform_indices = @transform_1, window_bounds = array<i64: 1, 128>}]} {
    %c0 = arith.constant 0 : index
    %c0_0 = arith.constant 0 : index
    %0 = vector.load %arg1[%c0, %c0_0] : memref<1x128xf32, #tpu.memory_space<vmem>>, vector<1x128xf32>
    %c0_1 = arith.constant 0 : index
    %c0_2 = arith.constant 0 : index
    %1 = vector.load %arg2[%c0_1, %c0_2] : memref<1x128xf32, #tpu.memory_space<vmem>>, vector<1x128xf32>
    tpu.vector_store %arg2[%c0_1, %c0_2], %0 {strides = array<i32>} : memref<1x128xf32, #tpu.memory_space<vmem>>, vector<1x128xf32>,
    return
  }
  func.func @transform_0(%arg0: i32) -> (i32, i32) {
    %c0_i32 = arith.constant 0 : i32
    %c0_i32_0 = arith.constant 0 : i32
    return %arg0, %c0_i32 : i32, i32
  }
  func.func @transform_1(%arg0: i32) -> (i32, i32) {
    %c0_i32 = arith.constant 0 : i32
    %c0_i32_0 = arith.constant 0 : i32
    return %arg0, %c0_i32 : i32, i32
  }
}

</mosaic_0001>

<bundles_post_ra>
// kernel: tpu_custom_call.1
= control target key start
LH: loop header
LB: loop body
LE: loop exit
PB: predicated region body
PF: predicated region fallthrough
CT: control target
= control target key end

     0   :  { %6 = vsyncpa [#allocation3], 0  ;;  %s102_s0 = inlined_call_operand.hbm [shape: f32[1,128], index: 0, kind: input, shape index: {}]   ;;  %s103_s1 = inlined_call_operand.hbm [shape: f32[1,128], index: 1, kind: output, shape index: {}]  }
   0x1   :  { %7 = vsyncpa [#allocation4], 0  ;;  %s84_s6 = smov [#allocation2]  }
   0x2   :  { %s14_s7 = sshll.u32 %s84_s6, 4  ;;  %s15_s7 = int_to_ptr.vmem [resolvable:$true] %s14_s7 }
   0x3   :  { %s48_s8 = scalar_lea.vmem %s15_s7, 16  ;;  %s52_s9 = scalar_lea.vmem %s15_s7, 32 }
   0x4   :  { %p49_p0 = scmp.ne.s32.totalorder %s15_s7, %s48_s8  ;;  %p53_p1 = scmp.lt.s32.totalorder %s15_s7, %s15_s7 }
   0x5   :  { %p54_p2 = scmp.lt.s32.totalorder %s52_s9, %s48_s8 }
   0x7   :  { %p55_p3 = por %p54_p2, %p53_p1 }
   0x9   :  { %p56_p4 = pnand %p55_p3, %p49_p0 }
   0xb   :  { %59 = shalt.err (!%p56_p4)
}
   0xc   :  { %17 = dma.hbm_to_vmem [thread:$0]  %s102_s0, 16, %s15_s7, [#allocation3]  }
   0xd   :  { %80 = dma.done.wait [#allocation3], 16  }
   0xe   :  { %81 = vsyncadd [#allocation3], 4294967280  ;;  %s85_s12 = smov [#allocation5]   ;;  %v21_v0 = vld [vmem:[#allocation2] sm:$0x1] }
   0xf   :  { %s29_s13 = sshll.u32 %s85_s12, 4  ;;  %22 = vst [vmem:[#allocation5] sm:$0x1] %v21_v0  ;;  %s30_s13 = int_to_ptr.vmem [resolvable:$true] %s29_s13 }
  0x10   :  { %s60_s14 = scalar_lea.vmem %s30_s13, 16  ;;  %s64_s15 = scalar_lea.vmem %s30_s13, 32 }
  0x11   :  { %p61_p5 = scmp.ne.s32.totalorder %s30_s13, %s60_s14  ;;  %p65_p6 = scmp.lt.s32.totalorder %s30_s13, %s30_s13 }
  0x12   :  { %p66_p7 = scmp.lt.s32.totalorder %s64_s15, %s60_s14 }
  0x14   :  { %p67_p8 = por %p66_p7, %p65_p6 }
  0x16   :  { %p68_p9 = pnand %p67_p8, %p61_p5 }
  0x18   :  { %71 = shalt.err (!%p68_p9)
}
  0x19   :  { %32 = dma.vmem_to_hbm [thread:$0]  %s30_s13, 16, %s103_s1, [#allocation4]  }
  0x1a   :  { %82 = dma.done.wait [#allocation4], 16  }
  0x1b   :  { %83 = vsyncadd [#allocation4], 4294967280 }
  0x1c   :  { %36 = vsyncpa [#allocation3], 1 }
  0x1d   :  { %37 = vsyncpa [#allocation4], 1 }

</bundles_post_ra>
